<compile_context>
chip_gen: v5e
topology: v5e:2x2
jax: 0.10.0
libtpu: 0.0.40
codegen_flags: <defaults>
</compile_context>

<pallas_src>
import functools

import jax
import jax.numpy as jnp
from jax.experimental import pallas as pl
from jax.experimental.pallas import tpu as pltpu

BN_EPS = 1e-5


def _round_up(x, m):
    return ((x + m - 1) // m) * m


def _critic_kernel(s_ref, a_ref, ws_ref, wa_ref, w1_ref, w2_ref, bias_ref,
                   b3_ref, out_ref, *, h0, h1, h2):
    """One batch tile: states (tb, n_s), actions (tb, n_a) -> q (tb, 1).

    BN (eval) is pre-folded into w2/b2 and w3/b3; Dropout is identity (eval).
    Compute dtype (bf16 or f32) follows the weight refs; all MXU accumulation
    and all bias adds are f32.
    """
    cd = ws_ref.dtype                         # compute dtype (bf16 or f32)

    bias = bias_ref[...]                      # (5, wmax) packed f32 slab
    bs = bias[0:1, :h0]
    ba = bias[1:2, :h0]
    b1 = bias[2:3, :h1]
    b2 = bias[3:4, :h2]                       # BN1 folded in
    w3 = bias[4:5, :h2]                       # folded W3 as an f32 row

    # State / action branches: Linear + tanh.  Inputs cast to the compute
    # dtype in-kernel (VPU, free) so the MXU runs its single-pass bf16 path.
    s = jnp.tanh((jnp.dot(s_ref[...].astype(cd), ws_ref[...],
                          preferred_element_type=jnp.float32) + bs).astype(cd))
    a = jnp.tanh((jnp.dot(a_ref[...].astype(cd), wa_ref[...],
                          preferred_element_type=jnp.float32) + ba).astype(cd))

    # Linear(2*h0, h1): two matmuls on the two halves of W1 instead of a
    # cross-lane concat of [s | a].
    w1 = w1_ref[...]
    h = (jnp.dot(s, w1[:h0], preferred_element_type=jnp.float32)
         + jnp.dot(a, w1[h0:], preferred_element_type=jnp.float32) + b1)
    h = jnp.maximum(h, 0.2 * h)               # LeakyReLU(0.2), f32 VPU

    # [Dropout=id, BN1 folded] Linear(h1, h2) + tanh.
    h = jnp.tanh((jnp.dot(h.astype(cd), w2_ref[...],
                          preferred_element_type=jnp.float32) + b2).astype(cd))

    # [Dropout=id, BN2 folded] Linear(h2, 1) as VPU multiply + lane reduce
    # (an N=1 MXU pass is wasted); scalar output bias from SMEM.
    q = jnp.sum(h.astype(jnp.float32) * w3, axis=-1, keepdims=True)
    out_ref[...] = q + b3_ref[0, 0]


def fold_params(p, compute_dtype=jnp.bfloat16):
    """One-time trace-time folding; call once and reuse across forward calls.

    Folds BN1/BN2 (eval) into the following Linears, packs the row biases and
    the folded W3 row into a single f32 slab, and casts the matmul weights to
    `compute_dtype` (bf16 by default; pass jnp.float32 for exact numerics,
    e.g. on v5e).
    """
    h0 = p["ws"].shape[1]
    h1 = p["w1"].shape[1]
    h2 = p["w2"].shape[1]

    # BN1 (eval) folded into Linear(h1, h2).
    s1 = p["g1"] * jax.lax.rsqrt(p["v1"] + BN_EPS)              # (1, h1)
    w2f = s1.reshape(h1, 1) * p["w2"]
    b2f = (p["be1"] - p["m1"] * s1) @ p["w2"] + p["b2"]         # (1, h2)

    # BN2 (eval) folded into Linear(h2, 1).
    s2 = p["g2"] * jax.lax.rsqrt(p["v2"] + BN_EPS)              # (1, h2)
    w3f = s2.reshape(h2, 1) * p["w3"]                           # (h2, 1)
    b3f = (p["be2"] - p["m2"] * s2) @ p["w3"] + p["b3"]         # (1, 1)

    # Pack row biases + folded W3 row into one small f32 slab (fewer refs).
    wmax = max(h0, h1, h2)
    bias = jnp.zeros((5, wmax), jnp.float32)
    bias = bias.at[0, :h0].set(p["bs"][0])
    bias = bias.at[1, :h0].set(p["ba"][0])
    bias = bias.at[2, :h1].set(p["b1"][0])
    bias = bias.at[3, :h2].set(b2f[0])
    bias = bias.at[4, :h2].set(w3f[:, 0])

    cd = compute_dtype
    return dict(ws=p["ws"].astype(cd), wa=p["wa"].astype(cd),
                w1=p["w1"].astype(cd), w2=w2f.astype(cd),
                bias=bias, b3=b3f.astype(jnp.float32))


@functools.partial(jax.jit, static_argnames=("block_b",))
def critic_forward(states, actions, f, block_b=4096):
    """Pallas forward.  `f` is the output of fold_params (folded parameters)."""
    B, n_s = states.shape
    n_a = actions.shape[1]
    h0 = f["ws"].shape[1]
    h1 = f["w1"].shape[1]
    h2 = f["w2"].shape[1]

    # Batch tile: big enough to amortize the ~0.35us per-grid-step overhead,
    # but capped at ~ceil(B/2) so there are always >=2 grid steps (v7x has two
    # TensorCores to feed via the "parallel" semantic).  Multiple of 8 rows.
    half = _round_up(max((B + 1) // 2, 1), 8)
    tb = max(8, min(block_b, half))
    grid = pl.cdiv(B, tb)

    # Scoped-VMEM budget: double-buffered input tiles + lane-padded (tb, 1)
    # output blocks + rough activation temporaries, with 2x headroom.
    vmem_bytes = (2 * tb * (n_s * states.dtype.itemsize
                            + n_a * actions.dtype.itemsize)
                  + 2 * tb * 512                         # (tb,1) f32, lane-padded
                  + 2 * tb * (2 * h0 + h1 + 2 * h2) * 4  # activations (rough)
                  + (1 << 20))                           # weights/bias + slack
    vmem_limit = int(min(max(2 * vmem_bytes, 32 << 20), 48 << 20))

    flops = 2 * B * (n_s * h0 + n_a * h0 + 2 * h0 * h1 + h1 * h2 + h2)
    transcendentals = B * (2 * h0 + h2)
    bytes_accessed = (states.size * states.dtype.itemsize
                      + actions.size * actions.dtype.itemsize
                      + B * 4
                      + sum(int(f[k].size) * f[k].dtype.itemsize
                            for k in ("ws", "wa", "w1", "w2", "bias", "b3")))
    cost = pl.CostEstimate(flops=int(flops),
                           transcendentals=int(transcendentals),
                           bytes_accessed=int(bytes_accessed))

    full = lambda shape: pl.BlockSpec(shape, lambda i: (0, 0))  # grid-invariant
    kernel = functools.partial(_critic_kernel, h0=h0, h1=h1, h2=h2)

    q = pl.pallas_call(
        kernel,
        out_shape=jax.ShapeDtypeStruct((B, 1), jnp.float32),
        grid=(grid,),
        in_specs=[
            pl.BlockSpec((tb, n_s), lambda i: (i, 0)),          # streamed states
            pl.BlockSpec((tb, n_a), lambda i: (i, 0)),          # streamed actions
            full(f["ws"].shape),                                # Ws
            full(f["wa"].shape),                                # Wa
            full(f["w1"].shape),                                # W1
            full(f["w2"].shape),                                # W2 (BN1 folded)
            full(f["bias"].shape),                              # biases + W3 row
            pl.BlockSpec(memory_space=pltpu.MemorySpace.SMEM),  # scalar b3'
        ],
        out_specs=pl.BlockSpec((tb, 1), lambda i: (i, 0)),
        compiler_params=pltpu.CompilerParams(
            dimension_semantics=("parallel",),
            vmem_limit_bytes=vmem_limit),
        cost_estimate=cost,
    )(states, actions, f["ws"], f["wa"], f["w1"], f["w2"], f["bias"], f["b3"])
    return q


def init_params(key, n_states, n_actions, hidden_sizes):
    """Mirrors Critic._init_weights (N(0, 0.01) weights, U(-0.1, 0.1) biases).

    Linear weights are stored pre-transposed as [in, out].
    """
    h0, h1, h2 = hidden_sizes
    keys = jax.random.split(key, 10)

    def lin(kw, kb, fan_in, fan_out):
        w = 0.01 * jax.random.normal(kw, (fan_in, fan_out), jnp.float32)
        b = jax.random.uniform(kb, (1, fan_out), jnp.float32, -0.1, 0.1)
        return w, b

    ws, bs = lin(keys[0], keys[1], n_states, h0)
    wa, ba = lin(keys[2], keys[3], n_actions, h0)
    w1, b1 = lin(keys[4], keys[5], 2 * h0, h1)
    w2, b2 = lin(keys[6], keys[7], h1, h2)
    w3, b3 = lin(keys[8], keys[9], h2, 1)

    def bn(n):  # gamma, beta, running_mean, running_var (PyTorch defaults)
        return (jnp.ones((1, n), jnp.float32), jnp.zeros((1, n), jnp.float32),
                jnp.zeros((1, n), jnp.float32), jnp.ones((1, n), jnp.float32))

    g1, be1, m1, v1 = bn(h1)
    g2, be2, m2, v2 = bn(h2)

    return dict(ws=ws, bs=bs, wa=wa, ba=ba,
                w1=w1, b1=b1, g1=g1, be1=be1, m1=m1, v1=v1,
                w2=w2, b2=b2, g2=g2, be2=be2, m2=m2, v2=v2,
                w3=w3, b3=b3)


def critic_reference(states, actions, p):
    """Pure-JAX reference with UNfused BN / separate branches (eval mode)."""
    s = jnp.tanh(states @ p["ws"] + p["bs"])
    a = jnp.tanh(actions @ p["wa"] + p["ba"])
    x = jnp.concatenate([s, a], axis=1)
    h = x @ p["w1"] + p["b1"]
    h = jnp.where(h >= 0, h, 0.2 * h)
    h = (h - p["m1"]) / jnp.sqrt(p["v1"] + BN_EPS) * p["g1"] + p["be1"]
    h = jnp.tanh(h @ p["w2"] + p["b2"])
    h = (h - p["m2"]) / jnp.sqrt(p["v2"] + BN_EPS) * p["g2"] + p["be2"]
    return h @ p["w3"] + p["b3"]


if __name__ == "__main__":
    n_states, n_actions = 16, 8
    hidden_sizes = [32, 64, 32]

    key = jax.random.PRNGKey(0)
    kp, ks, ka, kb, k2 = jax.random.split(key, 5)
    params = init_params(kp, n_states, n_actions, hidden_sizes)

    # Perturb BN running stats / affines so the trace-time folding is
    # genuinely exercised (PyTorch defaults would make BN a near-identity).
    kb1, kb2, kb3, kb4, kb5, kb6 = jax.random.split(kb, 6)
    params["m1"] = 0.05 * jax.random.normal(kb1, params["m1"].shape)
    params["v1"] = jax.random.uniform(kb2, params["v1"].shape, minval=0.5, maxval=2.0)
    params["g1"] = jax.random.uniform(kb5, params["g1"].shape, minval=0.5, maxval=1.5)
    params["m2"] = 0.05 * jax.random.normal(kb3, params["m2"].shape)
    params["v2"] = jax.random.uniform(kb4, params["v2"].shape, minval=0.5, maxval=2.0)
    params["be2"] = 0.05 * jax.random.normal(kb6, params["be2"].shape)

    folded_f32 = fold_params(params, compute_dtype=jnp.float32)   # exact path
    folded_bf16 = fold_params(params)                             # default path

    # --- check 1: f32 compute, single tile (tight tolerance) ----------------
    B = 8
    states = jax.random.normal(ks, (B, n_states), jnp.float32)
    actions = jax.random.normal(ka, (B, n_actions), jnp.float32)
    out = jax.block_until_ready(critic_forward(states, actions, folded_f32))
    ref = critic_reference(states, actions, params)
    assert out.shape == (B, 1)
    assert jnp.allclose(out, ref, atol=1e-5, rtol=1e-5), \
        float(jnp.max(jnp.abs(out - ref)))

    # --- check 2: f32 compute, multi-step grid with a ragged last tile ------
    B2 = 200
    ks2, ka2 = jax.random.split(k2)
    states2 = jax.random.normal(ks2, (B2, n_states), jnp.float32)
    actions2 = jax.random.normal(ka2, (B2, n_actions), jnp.float32)
    out2 = jax.block_until_ready(
        critic_forward(states2, actions2, folded_f32, block_b=64))
    ref2 = critic_reference(states2, actions2, params)
    assert out2.shape == (B2, 1)
    assert jnp.allclose(out2, ref2, atol=1e-5, rtol=1e-5), \
        float(jnp.max(jnp.abs(out2 - ref2)))

    # --- check 3: bf16 weights/activations (deliberate precision trade) -----
    out3 = jax.block_until_ready(
        critic_forward(states2, actions2, folded_bf16, block_b=64))
    assert out3.shape == (B2, 1)
    assert jnp.allclose(out3, ref2, atol=1e-2, rtol=1e-2), \
        float(jnp.max(jnp.abs(out3 - ref2)))

    print("KERNEL_OK")
</pallas_src>

<mosaic_0001>
module attributes {stable_mosaic.version = 11 : i64} {
  func.func @_critic_kernel(%arg0: i32, %arg1: memref<8x16xf32, #tpu.memory_space<vmem>>, %arg2: memref<8x8xf32, #tpu.memory_space<vmem>>, %arg3: memref<16x32xf32, #tpu.memory_space<vmem>>, %arg4: memref<8x32xf32, #tpu.memory_space<vmem>>, %arg5: memref<64x64xf32, #tpu.memory_space<vmem>>, %arg6: memref<64x32xf32, #tpu.memory_space<vmem>>, %arg7: memref<5x64xf32, #tpu.memory_space<vmem>>, %arg8: memref<1x1xf32, #tpu.memory_space<smem>>, %arg9: memref<8x1xf32, #tpu.memory_space<vmem>>) attributes {dimension_semantics = [#tpu.dimension_semantics<parallel>], iteration_bounds = array<i64: 1>, scalar_prefetch = 0 : i64, scratch_operands = 0 : i64, tpu.core_type = #tpu.core_type<tc>, window_params = [{transform_indices = @transform_0, window_bounds = array<i64: 8, 16>}, {transform_indices = @transform_1, window_bounds = array<i64: 8, 8>}, {pipeline_mode = #tpu.pipeline_mode<synchronous>, transform_indices = @transform_2, window_bounds = array<i64: 16, 32>}, {pipeline_mode = #tpu.pipeline_mode<synchronous>, transform_indices = @transform_3, window_bounds = array<i64: 8, 32>}, {pipeline_mode = #tpu.pipeline_mode<synchronous>, transform_indices = @transform_4, window_bounds = array<i64: 64, 64>}, {pipeline_mode = #tpu.pipeline_mode<synchronous>, transform_indices = @transform_5, window_bounds = array<i64: 64, 32>}, {pipeline_mode = #tpu.pipeline_mode<synchronous>, transform_indices = @transform_6, window_bounds = array<i64: 5, 64>}, {transform_indices = @transform_7, window_bounds = array<i64: 1, 1>}, {transform_indices = @transform_8, window_bounds = array<i64: 8, 1>}]} {
    %c0 = arith.constant 0 : index
    %c0_0 = arith.constant 0 : index
    %0 = vector.load %arg7[%c0, %c0_0] : memref<5x64xf32, #tpu.memory_space<vmem>>, vector<5x64xf32>
    %1 = vector.extract_strided_slice %0 {offsets = [0, 0], sizes = [1, 32], strides = [1, 1]} : vector<5x64xf32> to vector<1x32xf32>
    %2 = vector.extract_strided_slice %0 {offsets = [1, 0], sizes = [1, 32], strides = [1, 1]} : vector<5x64xf32> to vector<1x32xf32>
    %3 = vector.extract_strided_slice %0 {offsets = [2, 0], sizes = [1, 64], strides = [1, 1]} : vector<5x64xf32> to vector<1x64xf32>
    %4 = vector.extract_strided_slice %0 {offsets = [3, 0], sizes = [1, 32], strides = [1, 1]} : vector<5x64xf32> to vector<1x32xf32>
    %5 = vector.extract_strided_slice %0 {offsets = [4, 0], sizes = [1, 32], strides = [1, 1]} : vector<5x64xf32> to vector<1x32xf32>
    %c0_1 = arith.constant 0 : index
    %c0_2 = arith.constant 0 : index
    %6 = vector.load %arg1[%c0_1, %c0_2] : memref<8x16xf32, #tpu.memory_space<vmem>>, vector<8x16xf32>
    %c0_3 = arith.constant 0 : index
    %c0_4 = arith.constant 0 : index
    %7 = vector.load %arg3[%c0_3, %c0_4] : memref<16x32xf32, #tpu.memory_space<vmem>>, vector<16x32xf32>
    %cst = arith.constant dense<0.000000e+00> : vector<8x32xf32>
    %8 = tpu.matmul %6, %7, %cst {dimension_numbers = #tpu.dot_dimension_numbers<[1], [0], [0], [1], [0, 0, 1, 1], [], []>} : vector<8x16xf32>, vector<16x32xf32>, vector<8x32xf32> -> vector<8x32xf32>
    %9 = vector.broadcast %1 : vector<1x32xf32> to vector<8x32xf32>
    %10 = arith.addf %8, %9 : vector<8x32xf32>
    %11 = math.tanh %10 : vector<8x32xf32>
    %c0_5 = arith.constant 0 : index
    %c0_6 = arith.constant 0 : index
    %12 = vector.load %arg2[%c0_5, %c0_6] : memref<8x8xf32, #tpu.memory_space<vmem>>, vector<8x8xf32>
    %c0_7 = arith.constant 0 : index
    %c0_8 = arith.constant 0 : index
    %13 = vector.load %arg4[%c0_7, %c0_8] : memref<8x32xf32, #tpu.memory_space<vmem>>, vector<8x32xf32>
    %cst_9 = arith.constant dense<0.000000e+00> : vector<8x32xf32>
    %14 = tpu.matmul %12, %13, %cst_9 {dimension_numbers = #tpu.dot_dimension_numbers<[1], [0], [0], [1], [0, 0, 1, 1], [], []>} : vector<8x8xf32>, vector<8x32xf32>, vector<8x32xf32> -> vector<8x32xf32>
    %15 = vector.broadcast %2 : vector<1x32xf32> to vector<8x32xf32>
    %16 = arith.addf %14, %15 : vector<8x32xf32>
    %17 = math.tanh %16 : vector<8x32xf32>
    %c0_10 = arith.constant 0 : index
    %c0_11 = arith.constant 0 : index
    %18 = vector.load %arg5[%c0_10, %c0_11] : memref<64x64xf32, #tpu.memory_space<vmem>>, vector<64x64xf32>
    %19 = vector.extract_strided_slice %18 {offsets = [0, 0], sizes = [32, 64], strides = [1, 1]} : vector<64x64xf32> to vector<32x64xf32>
    %cst_12 = arith.constant dense<0.000000e+00> : vector<8x64xf32>
    %20 = tpu.matmul %11, %19, %cst_12 {dimension_numbers = #tpu.dot_dimension_numbers<[1], [0], [0], [1], [0, 0, 1, 1], [], []>} : vector<8x32xf32>, vector<32x64xf32>, vector<8x64xf32> -> vector<8x64xf32>
    %21 = vector.extract_strided_slice %18 {offsets = [32, 0], sizes = [32, 64], strides = [1, 1]} : vector<64x64xf32> to vector<32x64xf32>
    %cst_13 = arith.constant dense<0.000000e+00> : vector<8x64xf32>
    %22 = tpu.matmul %17, %21, %cst_13 {dimension_numbers = #tpu.dot_dimension_numbers<[1], [0], [0], [1], [0, 0, 1, 1], [], []>} : vector<8x32xf32>, vector<32x64xf32>, vector<8x64xf32> -> vector<8x64xf32>
    %23 = arith.addf %20, %22 : vector<8x64xf32>
    %24 = vector.broadcast %3 : vector<1x64xf32> to vector<8x64xf32>
    %25 = arith.addf %23, %24 : vector<8x64xf32>
    %cst_14 = arith.constant 2.000000e-01 : f32
    %26 = vector.broadcast %cst_14 : f32 to vector<8x64xf32>
    %27 = arith.mulf %26, %25 : vector<8x64xf32>
    %28 = arith.maximumf %25, %27 : vector<8x64xf32>
    %c0_15 = arith.constant 0 : index
    %c0_16 = arith.constant 0 : index
    %29 = vector.load %arg6[%c0_15, %c0_16] : memref<64x32xf32, #tpu.memory_space<vmem>>, vector<64x32xf32>
    %cst_17 = arith.constant dense<0.000000e+00> : vector<8x32xf32>
    %30 = tpu.matmul %28, %29, %cst_17 {dimension_numbers = #tpu.dot_dimension_numbers<[1], [0], [0], [1], [0, 0, 1, 1], [], []>} : vector<8x64xf32>, vector<64x32xf32>, vector<8x32xf32> -> vector<8x32xf32>
    %31 = vector.broadcast %4 : vector<1x32xf32> to vector<8x32xf32>
    %32 = arith.addf %30, %31 : vector<8x32xf32>
    %33 = math.tanh %32 : vector<8x32xf32>
    %34 = vector.broadcast %5 : vector<1x32xf32> to vector<8x32xf32>
    %35 = arith.mulf %33, %34 : vector<8x32xf32>
    %cst_18 = arith.constant dense<0.000000e+00> : vector<8xf32>
    %36 = vector.multi_reduction <add>, %35, %cst_18 [1] : vector<8x32xf32> to vector<8xf32>
    %37 = vector.shape_cast %36 : vector<8xf32> to vector<8x1xf32>
    %c0_19 = arith.constant 0 : index
    %c0_20 = arith.constant 0 : index
    %38 = memref.load %arg8[%c0_19, %c0_20] : memref<1x1xf32, #tpu.memory_space<smem>>
    %39 = vector.broadcast %38 : f32 to vector<8x1xf32>
    %40 = arith.addf %37, %39 : vector<8x1xf32>
    %c0_21 = arith.constant 0 : index
    %c0_22 = arith.constant 0 : index
    %41 = vector.load %arg9[%c0_21, %c0_22] : memref<8x1xf32, #tpu.memory_space<vmem>>, vector<8x1xf32>
    tpu.vector_store %arg9[%c0_21, %c0_22], %40 {strides = array<i32>} : memref<8x1xf32, #tpu.memory_space<vmem>>, vector<8x1xf32>,
    return
  }
  func.func @transform_0(%arg0: i32) -> (i32, i32) {
    %c0_i32 = arith.constant 0 : i32
    %c0_i32_0 = arith.constant 0 : i32
    return %arg0, %c0_i32 : i32, i32
  }
  func.func @transform_1(%arg0: i32) -> (i32, i32) {
    %c0_i32 = arith.constant 0 : i32
    %c0_i32_0 = arith.constant 0 : i32
    return %arg0, %c0_i32 : i32, i32
  }
  func.func @transform_2(%arg0: i32) -> (i32, i32) {
    %c0_i32 = arith.constant 0 : i32
    %c0_i32_0 = arith.constant 0 : i32
    %c0_i32_1 = arith.constant 0 : i32
    return %c0_i32, %c0_i32_0 : i32, i32
  }
  func.func @transform_3(%arg0: i32) -> (i32, i32) {
    %c0_i32 = arith.constant 0 : i32
    %c0_i32_0 = arith.constant 0 : i32
    %c0_i32_1 = arith.constant 0 : i32
    return %c0_i32, %c0_i32_0 : i32, i32
  }
  func.func @transform_4(%arg0: i32) -> (i32, i32) {
    %c0_i32 = arith.constant 0 : i32
    %c0_i32_0 = arith.constant 0 : i32
    %c0_i32_1 = arith.constant 0 : i32
    return %c0_i32, %c0_i32_0 : i32, i32
  }
  func.func @transform_5(%arg0: i32) -> (i32, i32) {
    %c0_i32 = arith.constant 0 : i32
    %c0_i32_0 = arith.constant 0 : i32
    %c0_i32_1 = arith.constant 0 : i32
    return %c0_i32, %c0_i32_0 : i32, i32
  }
  func.func @transform_6(%arg0: i32) -> (i32, i32) {
    %c0_i32 = arith.constant 0 : i32
    %c0_i32_0 = arith.constant 0 : i32
    %c0_i32_1 = arith.constant 0 : i32
    return %c0_i32, %c0_i32_0 : i32, i32
  }
  func.func @transform_7(%arg0: i32) -> (i32, i32) {
    %c0_i32 = arith.constant 0 : i32
    %c0_i32_0 = arith.constant 0 : i32
    %c0_i32_1 = arith.constant 0 : i32
    return %c0_i32, %c0_i32_0 : i32, i32
  }
  func.func @transform_8(%arg0: i32) -> (i32, i32) {
    %c0_i32 = arith.constant 0 : i32
    %c0_i32_0 = arith.constant 0 : i32
    return %arg0, %c0_i32 : i32, i32
  }
}

</mosaic_0001>

<bundles_post_ra>
// kernel: critic_forward.1
= control target key start
LH: loop header
LB: loop body
LE: loop exit
PB: predicated region body
PF: predicated region fallthrough
CT: control target
= control target key end

     0   :  { %14 = vsyncpa [#allocation4], 0  ;;  %s412_s0 = inlined_call_operand.vmem [shape: f32[8,16], index: 0, kind: input, shape index: {}]   ;;  %s413_s1 = inlined_call_operand.vmem [shape: f32[8,8], index: 1, kind: input, shape index: {}]   ;;  %s414_s2 = inlined_call_operand.vmem [shape: f32[16,32], index: 2, kind: input, shape index: {}]   ;;  %s415_s3 = inlined_call_operand.hbm [shape: f32[8,32], index: 3, kind: input, shape index: {}]   ;;  %s416_s4 = inlined_call_operand.vmem [shape: f32[64,64], index: 4, kind: input, shape index: {}]   ;;  %s417_s5 = inlined_call_operand.vmem [shape: f32[64,32], index: 5, kind: input, shape index: {}]   ;;  %s418_s6 = inlined_call_operand.hbm [shape: f32[5,64], index: 6, kind: input, shape index: {}]   ;;  %s419_s7 = inlined_call_operand.<no memory space> [shape: f32[1,1], index: 7, kind: input, shape index: {}]   ;;  %s420_s8 = inlined_call_operand.vmem [shape: f32[8,1], index: 8, kind: output, shape index: {}]  }
   0x1   :  { %s27_s29 = sshll.u32 %s415_s3, 4  ;;  %s28_s29 = int_to_ptr.hbm [resolvable:$true] %s27_s29 }
   0x2   :  { %15 = vsyncpa [#allocation6], 0  ;;  %s290_s30 = smov [#allocation3]   ;;  %s42_s12 = sshll.u32 %s418_s6, 4  ;;  %s43_s12 = int_to_ptr.hbm [resolvable:$true] %s42_s12 }
   0x3   :  { %s29_s9 = sshll.u32 %s290_s30, 4  ;;  %s291_s13 = smov [#allocation5]   ;;  %s30_s9 = int_to_ptr.vmem [resolvable:$true] %s29_s9 }
   0x4   :  { %32 = dma.hbm_to_vmem [thread:$0]  %s28_s29, 128, %s30_s9, [#allocation4]  }
   0x5   :  { %s44_s14 = sshll.u32 %s291_s13, 4  ;;  %s45_s14 = int_to_ptr.vmem [resolvable:$true] %s44_s14 }
   0x6   :  { %47 = dma.hbm_to_vmem [thread:$0]  %s43_s12, 128, %s45_s14, [#allocation6]  }
   0x7   :  { %286 = dma.done.wait [#allocation4], 128  }
   0x8   :  { %287 = vsyncadd [#allocation4], 4294967168 }
   0x9   :  { %288 = dma.done.wait [#allocation6], 128  }
   0xa   :  { %289 = vsyncadd [#allocation6], 4294967168  ;;  %v61_v0 = vld [vmem:[%s414_s2 + $0x8] sm:$0xff]  ;;  %v60_v1 = vld [vmem:[%s414_s2] sm:$0xff]  ;;  %vm63_vm0 = vcmask 130048   ;;  %vm91_vm1 = vcmask 64512   ;;  %v215_v44 = vstv %s419_s7 }
   0xb   :  { %81 = vmatpush.msra.mxu0 %v61_v0  ;;  %v59_v2 = vld [vmem:[%s412_s0] sm:$0xff]  ;;  %v119_v5 = vld [vmem:[%s416_s4 + $0x18] sm:$0xff]  ;;  %v118_v6 = vld [vmem:[%s416_s4 + $0x10] sm:$0xff]  ;;  %vm124_vm2 = vcmask 261120   ;;  %vm184_vm3 = vcmask 523264   ;;  %vm217_vm4 = vcmask 7168  }
   0xc   :  { %v89_v3 = vld [vmem:[#allocation3] sm:$0xff]  ;;  %163 = vmatpush.msra.mxu3 %v119_v5  ;;  %v117_v7 = vld [vmem:[%s416_s4 + $0x8] sm:$0xff]  ;;  %v123_v9 = vld [vmem:[%s416_s4 + $0x38] sm:$0xff] }
   0xd   :  { %82 = vmatpush.msra.mxu0 %v60_v1  ;;  %v88_v4 = vld [vmem:[%s413_s1] sm:$0xff]  ;;  %140 = vmatpush.msra.mxu2 %v123_v9  ;;  %v122_v10 = vld [vmem:[%s416_s4 + $0x30] sm:$0xff]  ;;  %v121_v11 = vld [vmem:[%s416_s4 + $0x28] sm:$0xff] }
   0xe   :  { %225 = vmatmul.msk.f32.vlgmr.msra.gmra.mxu0 %vm63_vm0, %v59_v2  ;;  %164 = vmatpush.msra.mxu3 %v118_v6  ;;  %v116_v8 = vld [vmem:[%s416_s4] sm:$0xff]  ;;  %v58_v13 = vld [vmem:[#allocation5] sm:$0x1f]  ;;  %v182_v22 = vld [vmem:[%s417_s5 + $0x38] sm:$0xff] }
   0xf   :  { %110 = vmatpush.msrb.mxu0 %v89_v3  ;;  %141 = vmatpush.msra.mxu2 %v122_v10  ;;  %v120_v12 = vld [vmem:[%s416_s4 + $0x20] sm:$0xff]  ;;  %v62_v14 = vperm.slane %v58_v13, 0  ;;  %v90_v17 = vperm.slane %v58_v13, 1  ;;  %v181_v23 = vld [vmem:[%s417_s5 + $0x30] sm:$0xff]  ;;  %v180_v24 = vld [vmem:[%s417_s5 + $0x28] sm:$0xff]  ;;  %v171_v30 = vperm.slane %v58_v13, 2 }
  0x10   :  { %165 = vmatpush.msra.mxu3 %v117_v7  ;;  %196 = vmatpush.msra.mxu1 %v182_v22  ;;  %v179_v25 = vld [vmem:[%s417_s5 + $0x20] sm:$0xff]  ;;  %v178_v26 = vld [vmem:[%s417_s5 + $0x18] sm:$0xff]  ;;  %v177_v27 = vld [vmem:[%s417_s5 + $0x10] sm:$0xff]  ;;  %v183_v37 = vperm.slane %v58_v13, 3  ;;  %v209_v40 = vperm.slane %v58_v13, 4 }
  0x11   :  { %142 = vmatpush.msra.mxu2 %v121_v11  ;;  %v176_v28 = vld [vmem:[%s417_s5 + $0x8] sm:$0xff]  ;;  %v175_v29 = vld [vmem:[%s417_s5] sm:$0xff] }
  0x12   :  { %166 = vmatpush.msra.mxu3 %v116_v8  ;;  %197 = vmatpush.msra.mxu1 %v181_v23 }
  0x13   :  { %143 = vmatpush.msra.mxu2 %v120_v12 }
  0x14   :  { %198 = vmatpush.msra.mxu1 %v180_v24 }
  0x16   :  { %226 = vmatmul.msk.f32.vlgmr.msrb.gmra.mxu0 %vm91_vm1, %v88_v4  ;;  %199 = vmatpush.msra.mxu1 %v179_v25 }
  0x18   :  { %200 = vmatpush.msra.mxu1 %v178_v26 }
  0x1a   :  { %201 = vmatpush.msra.mxu1 %v177_v27 }
  0x1c   :  { %202 = vmatpush.msra.mxu1 %v176_v28 }
  0x1e   :  { %203 = vmatpush.msra.mxu1 %v175_v29 }
  0x8b   :  { %v84_v15 = vpop.f32.mrf.mxu0 }
  0x8c   :  { %v85_v16 = vadd.f32 %v84_v15, %v62_v14 }
  0x8e   :  { %232 = vtanh.f32 %v85_v16 }
  0x93   :  { %v112_v18 = vpop.f32.mrf.mxu0 }
  0x94   :  { %v233_v19 = vpop.eup %232  ;;  %v113_v20 = vadd.f32 %v112_v18, %v90_v17 }
  0x95   :  { %228 = vmatmul.msk.f32.vlgmr.msra.gmra.mxu3 %vm124_vm2, %v233_v19 }
  0x96   :  { %234 = vtanh.f32 %v113_v20 }
  0x9c   :  { %v235_v21 = vpop.eup %234 }
  0x9d   :  { %227 = vmatmul.msk.f32.vlgmr.msra.gmra.mxu2 %vm124_vm2, %v235_v21 }
 0x118   :  { %v168_v31 = vpop.f32.mrf.mxu3 }
 0x120   :  { %v145_v32 = vpop.f32.mrf.mxu2 }
 0x121   :  { %v169_v33 = vadd.f32 %v168_v31, %v145_v32 }
 0x123   :  { %v172_v34 = vadd.f32 %v171_v30, %v169_v33 }
 0x125   :  { %v173_v35 = vmul.f32 0.2, %v172_v34 }
 0x127   :  { %v174_v36 = vmax.f32 %v172_v34, %v173_v35 }
 0x129   :  { %229 = vmatmul.msk.f32.vlgmr.msra.gmra.mxu1 %vm184_vm3, %v174_v36 }
 0x1a6   :  { %v205_v38 = vpop.f32.mrf.mxu1 }
 0x1a7   :  { %v206_v39 = vadd.f32 %v205_v38, %v183_v37 }
 0x1a9   :  { %236 = vtanh.f32 %v206_v39 }
 0x1af   :  { %v237_v41 = vpop.eup %236 }
 0x1b0   :  { %v210_v42 = vmul.f32 %v237_v41, %v209_v40 }
 0x1b2   :  { %v211_v43 = vsel %vm124_vm2, %v210_v42, 0.0 }
 0x1b3   :  { %212 = vadd.xlane.f32.xlu0 %v211_v43 }
 0x226   :  { %v213_v45 = vpop.xlane.xlu0 %212 }
 0x227   :  { %v216_v46 = vadd.f32 %v215_v44, %v213_v45 }
 0x229   :  { %218 = vst.msk [vmem:[%s420_s8] sm:$0xff] %vm217_vm4, %v216_v46 }
 0x22a   :  { %223 = vsyncpa [#allocation4], 1 }
 0x22b   :  { %224 = vsyncpa [#allocation6], 1 }

</bundles_post_ra>
